<compile_context>
chip_gen: v5e
topology: v5e:2x2
jax: 0.10.0
libtpu: 0.0.40
codegen_flags: <defaults>
</compile_context>

<pallas_src>
from functools import partial

import jax
import jax.numpy as jnp
from jax.experimental import pallas as pl
from jax.experimental.pallas import tpu as pltpu

F32 = jnp.float32
MXU_DT = jnp.bfloat16                                   # MXU operand dtype
NEG_MAX = float(jnp.finfo(jnp.float32).max)             # torch.finfo(f32).max


def _pick_tile(dim, target, align):
    """Largest `align`-multiple <= target that divides dim, else full extent."""
    if dim <= target:
        return dim
    t = (target // align) * align
    while t >= align:
        if dim % t == 0:
            return t
        t -= align
    return dim


# ----------------------------------------------------------------------------
# Pallas kernels
# ----------------------------------------------------------------------------

def _ln_kernel(x_ref, g_ref, b_ref, o_ref):
    """LayerNorm over last dim. x:(tm,D), g/b:(1,D)."""
    x = x_ref[...]
    mu = jnp.mean(x, axis=-1, keepdims=True)
    xc = x - mu
    var = jnp.mean(xc * xc, axis=-1, keepdims=True)
    o_ref[...] = xc * jax.lax.rsqrt(var + 1e-5) * g_ref[...] + b_ref[...]


def _mm_kernel(x_ref, w_ref, b_ref, *rest, act, has_res):
    """Tiled y = x @ w + b (+act, +residual) with f32 accumulator over K grid."""
    if has_res:
        r_ref, o_ref, acc_ref = rest
    else:
        o_ref, acc_ref = rest
        r_ref = None

    @pl.when(pl.program_id(2) == 0)
    def _():
        acc_ref[...] = jnp.zeros_like(acc_ref)

    acc_ref[...] += jnp.dot(x_ref[...], w_ref[...],
                            preferred_element_type=jnp.float32)

    @pl.when(pl.program_id(2) == pl.num_programs(2) - 1)
    def _():
        y = acc_ref[...] + b_ref[...]
        if act == "relu":
            y = jnp.maximum(y, 0.0)
        if has_res:
            y = y + r_ref[...]
        o_ref[...] = y.astype(o_ref.dtype)


def _ln_mm_kernel(x_ref, g_ref, bln_ref, w_ref, b_ref, *rest, act, has_res):
    """Fused LayerNorm(x) @ w + b (+act, +residual). K untiled (full rows)."""
    if has_res:
        r_ref, o_ref = rest
    else:
        (o_ref,) = rest
        r_ref = None
    x = x_ref[...]
    mu = jnp.mean(x, axis=-1, keepdims=True)
    xc = x - mu
    var = jnp.mean(xc * xc, axis=-1, keepdims=True)
    xn = xc * jax.lax.rsqrt(var + 1e-5) * g_ref[...] + bln_ref[...]
    y = jnp.dot(xn.astype(w_ref.dtype), w_ref[...],
                preferred_element_type=jnp.float32)
    y = y + b_ref[...]
    if act == "relu":
        y = jnp.maximum(y, 0.0)
    if has_res:
        y = y + r_ref[...]
    o_ref[...] = y.astype(o_ref.dtype)


def _mha_kernel(qkv_ref, idc_ref, idr_ref, len_ref, qg_ref, kg_ref, o_ref,
                *, heads, dim_head):
    """Per-batch MHA with RMSNorm on q/k and an in-kernel-built mask bias.

    qkv block: (1, L, 3*H*dh) bf16; ids col/row: (1, L, 1)/(1, 1, L) int32;
    lengths: (B,) int32 in SMEM; qg/kg: (H, dh); out: (1, L, H*dh) f32.
    """
    b = pl.program_id(0)
    L = qkv_ref.shape[1]
    inner = heads * dim_head
    scale = float(dim_head) ** 0.5

    # Additive mask bias, built once per batch (hoisted out of the head loop).
    # NOTE: reproduces the reference module exactly, including its
    # `lengths <= arange` key-pad convention.
    ids_i = idc_ref[0]                                   # (L, 1) int32
    ids_j = idr_ref[0]                                   # (1, L) int32
    same = ids_i == ids_j                                # (L, L)
    j_idx = jax.lax.broadcasted_iota(jnp.int32, (L, L), 1)
    keep = same & (len_ref[b] <= j_idx)
    bias = jnp.where(keep, 0.0, -NEG_MAX)                # (L, L) f32

    qkv = qkv_ref[0].astype(F32)                         # (L, 3*inner)

    def rms(t, gamma_row):
        inv = jax.lax.rsqrt(jnp.maximum(jnp.sum(t * t, axis=-1, keepdims=True),
                                        1e-24))
        return t * inv * scale * gamma_row               # matches F.normalize

    for h in range(heads):                               # static unroll, small H
        o0 = h * dim_head
        qh = rms(qkv[:, o0:o0 + dim_head], qg_ref[h:h + 1, :])
        kh = rms(qkv[:, inner + o0:inner + o0 + dim_head], kg_ref[h:h + 1, :])
        vh = qkv[:, 2 * inner + o0:2 * inner + o0 + dim_head]
        dots = jax.lax.dot_general(
            qh, kh, (((1,), (1,)), ((), ())),
            preferred_element_type=jnp.float32)          # (L, L)
        dots = dots + bias
        dots = dots - jnp.max(dots, axis=-1, keepdims=True)
        e = jnp.exp(dots)
        attn = e * pl.reciprocal(jnp.sum(e, axis=-1, keepdims=True), approx=True)
        o_ref[0, :, o0:o0 + dim_head] = jnp.dot(
            attn, vh, preferred_element_type=jnp.float32)


def _upsample_kernel(m_ref, uf_ref, o_ref, *, n_cha):
    """Convex upsampling combine, lane-dense over the 256 = 16x16 axis.

    m block: (1, HW, 9, 256) raw mask logits (0.25 scale fused here);
    uf block: (1, HW, 9, C) unfolded flow (x16 scale fused here);
    out block: (1, C, HW, 256).
    """
    m = m_ref[0] * 0.25                                  # (HW, 9, 256)
    mx = jnp.max(m, axis=1, keepdims=True)
    e = jnp.exp(m - mx)
    sm = e * pl.reciprocal(jnp.sum(e, axis=1, keepdims=True), approx=True)
    uf = uf_ref[0] * 16.0                                # (HW, 9, C)
    for ci in range(n_cha):                              # static (C == 2)
        w = uf[:, :, ci:ci + 1]                          # (HW, 9, 1)
        o_ref[0, ci] = jnp.sum(sm * w, axis=1)           # (HW, 256)


# ----------------------------------------------------------------------------
# Pallas wrappers
# ----------------------------------------------------------------------------

def pallas_layernorm(x2d, gamma, beta, tm_target=512):
    M, D = x2d.shape
    tm = _pick_tile(M, tm_target, 16)
    g = gamma.reshape(1, D).astype(F32)
    b = beta.reshape(1, D).astype(F32)
    return pl.pallas_call(
        _ln_kernel,
        out_shape=jax.ShapeDtypeStruct((M, D), F32),
        grid=(M // tm,),
        in_specs=[pl.BlockSpec((tm, D), lambda i: (i, 0)),
                  pl.BlockSpec((1, D), lambda i: (0, 0)),
                  pl.BlockSpec((1, D), lambda i: (0, 0))],
        out_specs=pl.BlockSpec((tm, D), lambda i: (i, 0)),
        compiler_params=pltpu.CompilerParams(
            dimension_semantics=("parallel",)),
    )(x2d.astype(F32), g, b)


def pallas_matmul(x2d, w, b=None, act="none", residual=None, out_dtype=F32,
                  tm_target=256, tn_target=256, tk_target=512):
    """Tiled MXU matmul, bf16 operands, f32 accumulation, fused epilogue."""
    M, K = x2d.shape
    K2, N = w.shape
    assert K == K2
    tm = _pick_tile(M, tm_target, 16)
    tn = _pick_tile(N, tn_target, 128)
    tk = _pick_tile(K, tk_target, 128)
    if b is None:
        b = jnp.zeros((N,), F32)
    b2 = b.reshape(1, N).astype(F32)

    has_res = residual is not None
    in_specs = [pl.BlockSpec((tm, tk), lambda i, j, k: (i, k)),
                pl.BlockSpec((tk, tn), lambda i, j, k: (k, j)),
                pl.BlockSpec((1, tn), lambda i, j, k: (0, j))]
    args = [x2d.astype(MXU_DT), w.astype(MXU_DT), b2]
    if has_res:
        in_specs.append(pl.BlockSpec((tm, tn), lambda i, j, k: (i, j)))
        args.append(residual.astype(F32))

    return pl.pallas_call(
        partial(_mm_kernel, act=act, has_res=has_res),
        out_shape=jax.ShapeDtypeStruct((M, N), out_dtype),
        grid=(M // tm, N // tn, K // tk),
        in_specs=in_specs,
        out_specs=pl.BlockSpec((tm, tn), lambda i, j, k: (i, j)),
        scratch_shapes=[pltpu.VMEM((tm, tn), F32)],
        compiler_params=pltpu.CompilerParams(
            dimension_semantics=("parallel", "parallel", "arbitrary")),
    )(*args)


def pallas_ln_matmul(x2d, ln_g, ln_b, w, b=None, act="none", residual=None,
                     out_dtype=F32, tm_target=256, tn_target=256):
    """Fused LayerNorm + matmul (K untiled; LN math in f32, MXU in bf16)."""
    M, K = x2d.shape
    K2, N = w.shape
    assert K == K2
    tm = _pick_tile(M, tm_target, 16)
    tn = _pick_tile(N, tn_target, 128)
    if b is None:
        b = jnp.zeros((N,), F32)
    b2 = b.reshape(1, N).astype(F32)
    g2 = ln_g.reshape(1, K).astype(F32)
    bln2 = ln_b.reshape(1, K).astype(F32)

    has_res = residual is not None
    in_specs = [pl.BlockSpec((tm, K), lambda i, j: (i, 0)),
                pl.BlockSpec((1, K), lambda i, j: (0, 0)),
                pl.BlockSpec((1, K), lambda i, j: (0, 0)),
                pl.BlockSpec((K, tn), lambda i, j: (0, j)),
                pl.BlockSpec((1, tn), lambda i, j: (0, j))]
    args = [x2d.astype(F32), g2, bln2, w.astype(MXU_DT), b2]
    if has_res:
        in_specs.append(pl.BlockSpec((tm, tn), lambda i, j: (i, j)))
        args.append(residual.astype(F32))

    return pl.pallas_call(
        partial(_ln_mm_kernel, act=act, has_res=has_res),
        out_shape=jax.ShapeDtypeStruct((M, N), out_dtype),
        grid=(M // tm, N // tn),
        in_specs=in_specs,
        out_specs=pl.BlockSpec((tm, tn), lambda i, j: (i, j)),
        compiler_params=pltpu.CompilerParams(
            dimension_semantics=("parallel", "parallel")),
    )(*args)


def pallas_mha(qkv, ids_col, ids_row, lengths, q_gamma, k_gamma, heads, dh):
    B, L, three_inner = qkv.shape
    inner = heads * dh
    assert three_inner == 3 * inner
    return pl.pallas_call(
        partial(_mha_kernel, heads=heads, dim_head=dh),
        out_shape=jax.ShapeDtypeStruct((B, L, inner), F32),
        grid=(B,),
        in_specs=[
            pl.BlockSpec((1, L, three_inner), lambda b: (b, 0, 0)),
            pl.BlockSpec((1, L, 1), lambda b: (b, 0, 0)),
            pl.BlockSpec((1, 1, L), lambda b: (b, 0, 0)),
            pl.BlockSpec(memory_space=pltpu.MemorySpace.SMEM),
            pl.BlockSpec((heads, dh), lambda b: (0, 0)),
            pl.BlockSpec((heads, dh), lambda b: (0, 0)),
        ],
        out_specs=pl.BlockSpec((1, L, inner), lambda b: (b, 0, 0)),
        compiler_params=pltpu.CompilerParams(
            dimension_semantics=("parallel",)),
    )(qkv, ids_col.astype(jnp.int32), ids_row.astype(jnp.int32),
      lengths.astype(jnp.int32), q_gamma.astype(F32), k_gamma.astype(F32))


def pallas_upsample_combine(mask_r, uf_r):
    B, HW, K9, P = mask_r.shape           # P = 256
    _, _, _, C = uf_r.shape               # C = 2
    return pl.pallas_call(
        partial(_upsample_kernel, n_cha=C),
        out_shape=jax.ShapeDtypeStruct((B, C, HW, P), F32),
        grid=(B,),
        in_specs=[pl.BlockSpec((1, HW, K9, P), lambda b: (b, 0, 0, 0)),
                  pl.BlockSpec((1, HW, K9, C), lambda b: (b, 0, 0, 0))],
        out_specs=pl.BlockSpec((1, C, HW, P), lambda b: (b, 0, 0, 0)),
        compiler_params=pltpu.CompilerParams(
            dimension_semantics=("parallel",)),
    )(mask_r.astype(F32), uf_r.astype(F32))


# ----------------------------------------------------------------------------
# Convs (NHWC im2col + tiled Pallas matmul)
# ----------------------------------------------------------------------------
# TODO(synk): for large spatial dims an in-kernel 9-tap shifted-window
# accumulation would avoid the 9x im2col copy; at ph=pw=2 im2col is negligible.

def conv2d_3x3_nhwc(x, w, b, relu=False):
    Bc, H, W, Cin = x.shape
    O = w.shape[0]
    xp = jnp.pad(x, ((0, 0), (1, 1), (1, 1), (0, 0)))
    pats = [xp[:, ki:ki + H, kj:kj + W, :] for ki in range(3) for kj in range(3)]
    cols = jnp.concatenate(pats, axis=-1).reshape(Bc * H * W, 9 * Cin)
    wm = w.transpose(2, 3, 1, 0).reshape(9 * Cin, O)     # (ki,kj,c) -> O
    out = pallas_matmul(cols, wm, b, act="relu" if relu else "none")
    return out.reshape(Bc, H, W, O)


def conv2d_1x1_nhwc(x, w, b, relu=False):
    Bc, H, W, Cin = x.shape
    O = w.shape[0]
    cols = x.reshape(Bc * H * W, Cin)
    wm = w.reshape(O, Cin).T
    out = pallas_matmul(cols, wm, b, act="relu" if relu else "none")
    return out.reshape(Bc, H, W, O)


# ----------------------------------------------------------------------------
# Host-side glue (patchify, coords) — matches PyTorch semantics
# ----------------------------------------------------------------------------

def coords_grid_nchw(batch, ht, wd):
    y, x = jnp.meshgrid(jnp.arange(ht), jnp.arange(wd), indexing="ij")
    coords = jnp.stack([x, y], axis=0).astype(F32)       # (2, ht, wd)
    return jnp.broadcast_to(coords[None], (batch, 2, ht, wd))


def coords_grid_nhwc(batch, ht, wd):
    y, x = jnp.meshgrid(jnp.arange(ht), jnp.arange(wd), indexing="ij")
    coords = jnp.stack([x, y], axis=-1).astype(F32)      # (ht, wd, 2)
    return jnp.broadcast_to(coords[None], (batch, ht, wd, 2))


def prepare_batch(batched_images, p):
    """Ragged list-of-lists patchify + pad_sequence; returns ids/lengths
    (the attention mask itself is rebuilt inside the MHA kernel)."""
    batched_sequences, batched_positions, batched_image_ids = [], [], []
    image_bak, ph, pw = None, None, None
    for images in batched_images:
        image_bak = images[0][None]                      # (1,c,H,W)
        seqs, poss, ids = [], [], []
        for image_id, image in enumerate(images):
            c_, H, W = image.shape
            assert H % p == 0 and W % p == 0
            ph, pw = H // p, W // p
            hh, ww = jnp.meshgrid(jnp.arange(ph), jnp.arange(pw), indexing="ij")
            pos = jnp.stack([hh, ww], axis=-1).reshape(ph * pw, 2)
            seq = (image.reshape(c_, ph, p, pw, p)
                   .transpose(1, 3, 0, 2, 4)
                   .reshape(ph * pw, c_ * p * p))
            ids.append(jnp.full((ph * pw,), image_id, dtype=jnp.int32))
            seqs.append(seq)
            poss.append(pos)
        batched_image_ids.append(jnp.concatenate(ids))
        batched_sequences.append(jnp.concatenate(seqs, axis=0))
        batched_positions.append(jnp.concatenate(poss, axis=0))

    lengths = jnp.array([s.shape[0] for s in batched_sequences], dtype=jnp.int32)
    max_len = int(lengths.max())

    def pad_to(x, L):
        padw = [(0, L - x.shape[0])] + [(0, 0)] * (x.ndim - 1)
        return jnp.pad(x, padw)

    ids_p = jnp.stack([pad_to(t, max_len) for t in batched_image_ids])
    patches = jnp.stack([pad_to(t, max_len) for t in batched_sequences])
    patch_positions = jnp.stack([pad_to(t, max_len) for t in batched_positions])
    return patches, patch_positions, ids_p, lengths, image_bak, ph, pw


# ----------------------------------------------------------------------------
# Parameter initialization (deterministic, synthetic)
# ----------------------------------------------------------------------------

def init_params(key, cfg):
    dim, heads, dh = cfg["dim"], cfg["heads"], cfg["dim_head"]
    depth, mlp_dim = cfg["depth"], cfg["mlp_dim"]
    p, c = cfg["patch_size"], cfg["channels"]
    patch_dim = c * p * p
    inner = heads * dh
    pred_dim = p * p * 2                                  # 512 for p=16
    hidden = pred_dim                                     # UpdateBlock hidden
    ph_dim = cfg["image_size"] // p

    ks = iter(jax.random.split(key, 64))

    def nrm(shape, scale=0.02):
        return (scale * jax.random.normal(next(ks), shape)).astype(F32)

    layers = []
    for _ in range(depth):
        layers.append(dict(
            attn_ln_g=jnp.ones((dim,), F32),
            wqkv=nrm((dim, 3 * inner)),                   # fused Wq | Wk | Wv
            q_gamma=jnp.ones((heads, dh), F32),
            k_gamma=jnp.ones((heads, dh), F32),
            wo=nrm((inner, dim)),
            ff_ln_g=jnp.ones((dim,), F32),
            ff_w1=nrm((dim, mlp_dim)), ff_b1=jnp.zeros((mlp_dim,), F32),
            ff_w2=nrm((mlp_dim, dim)), ff_b2=jnp.zeros((dim,), F32),
        ))

    params = dict(
        patch_ln1_g=jnp.ones((patch_dim,), F32),
        patch_w=nrm((patch_dim, dim)), patch_b=jnp.zeros((dim,), F32),
        patch_ln2_g=jnp.ones((dim,), F32),
        pos_embed_height=nrm((ph_dim, dim)),
        pos_embed_width=nrm((ph_dim, dim)),
        layers=layers,
        final_ln_g=jnp.ones((dim,), F32),
        dec_ln_w=jnp.ones((dim,), F32), dec_ln_b=jnp.zeros((dim,), F32),
        dec_pred_w=nrm((dim, pred_dim)), dec_pred_b=jnp.zeros((pred_dim,), F32),
        # UpdateBlock (FlowHead + mask head), PyTorch OIHW weight layout
        mask_w1=nrm((256, hidden, 3, 3)), mask_b1=jnp.zeros((256,), F32),
        mask_w2=nrm((16 * 16 * 9, 256, 1, 1)), mask_b2=jnp.zeros((16 * 16 * 9,), F32),
        flow_w1=nrm((256, hidden, 3, 3)), flow_b1=jnp.zeros((256,), F32),
        flow_w2=nrm((2, 256, 3, 3)), flow_b2=jnp.zeros((2,), F32),
    )
    return params


# ----------------------------------------------------------------------------
# Forward pass
# ----------------------------------------------------------------------------

def navit_forward(params, batched_images, cfg):
    p, dim, heads, dh = cfg["patch_size"], cfg["dim"], cfg["heads"], cfg["dim_head"]
    inner = heads * dh

    (patches, patch_positions, ids_p, lengths,
     image_bak, ph, pw) = prepare_batch(batched_images, p)
    B, L, patch_dim = patches.shape
    ids_col = ids_p.reshape(B, L, 1)
    ids_row = ids_p.reshape(B, 1, L)
    zeros_d = jnp.zeros((dim,), F32)
    zeros_pd = jnp.zeros((patch_dim,), F32)

    # --- to_patch_embedding: fused LN(patch_dim)+Linear, then LN(dim) ---
    x2 = patches.reshape(B * L, patch_dim).astype(F32)
    x2 = pallas_ln_matmul(x2, params["patch_ln1_g"], zeros_pd,
                          params["patch_w"], params["patch_b"])
    x2 = pallas_layernorm(x2, params["patch_ln2_g"], zeros_d)
    x = x2.reshape(B, L, dim)

    # --- factorized 2D positional embedding (gather kept as host glue) ---
    h_idx = patch_positions[..., 0]
    w_idx = patch_positions[..., 1]
    x = x + jnp.take(params["pos_embed_height"], h_idx, axis=0) \
          + jnp.take(params["pos_embed_width"], w_idx, axis=0)
    x2 = x.reshape(B * L, dim)                   # emb_dropout p=0 -> identity

    # --- Transformer ---
    for lyr in params["layers"]:
        # fused pre-LN + packed QKV projection (bf16 out for the MHA kernel)
        qkv = pallas_ln_matmul(x2, lyr["attn_ln_g"], zeros_d, lyr["wqkv"],
                               out_dtype=MXU_DT)
        attn_out = pallas_mha(qkv.reshape(B, L, 3 * inner), ids_col, ids_row,
                              lengths, lyr["q_gamma"], lyr["k_gamma"],
                              heads, dh)
        # out projection with fused residual
        x2 = pallas_matmul(attn_out.reshape(B * L, inner), lyr["wo"],
                           residual=x2)

        # FeedForward: fused pre-LN + W1, GELU, W2 with fused residual
        h1 = pallas_ln_matmul(x2, lyr["ff_ln_g"], zeros_d,
                              lyr["ff_w1"], lyr["ff_b1"])
        # TODO(synk): exact erf-GELU kept in plain JAX between the two Pallas
        # matmuls (erf lowering inside Mosaic is not guaranteed).
        h1 = jax.nn.gelu(h1, approximate=False)
        x2 = pallas_matmul(h1, lyr["ff_w2"], lyr["ff_b2"], residual=x2)

    x2 = pallas_layernorm(x2, params["final_ln_g"], zeros_d)

    # --- decoder head: fused LN + prediction ---
    x2 = pallas_ln_matmul(x2, params["dec_ln_w"], params["dec_ln_b"],
                          params["dec_pred_w"], params["dec_pred_b"])

    # --- UpdateBlock in NHWC (no NCHW transposes) ---
    imgf = x2.reshape(B, ph, pw, p * p * 2)              # (B, ph, pw, 512)
    m1 = conv2d_3x3_nhwc(imgf, params["mask_w1"], params["mask_b1"], relu=True)
    mask_conv = conv2d_1x1_nhwc(m1, params["mask_w2"], params["mask_b2"])
    f1 = conv2d_3x3_nhwc(imgf, params["flow_w1"], params["flow_b1"], relu=True)
    dflow = conv2d_3x3_nhwc(f1, params["flow_w2"], params["flow_b2"])  # (B,h,w,2)

    Hc, Wc = image_bak.shape[-2:]
    coodslar = coords_grid_nchw(1, Hc, Wc)
    coords0 = coords_grid_nhwc(1, Hc // 16, Wc // 16)
    coords1 = coords0 + dflow
    flow = coords1 - coords0                             # (B, h, w, 2)

    # --- upsample_flow: softmax(9) convex combination (lane-dense kernel) ---
    Bn, Hh, Ww, _ = flow.shape
    fp = jnp.pad(flow, ((0, 0), (1, 1), (1, 1), (0, 0)))
    pats = [fp[:, ki:ki + Hh, kj:kj + Ww, :] for ki in range(3) for kj in range(3)]
    uf_r = jnp.stack(pats, axis=3).reshape(Bn, Hh * Ww, 9, 2)    # x16 fused in-kernel
    mask_r = mask_conv.reshape(Bn, Hh * Ww, 9, 256)              # 0.25 fused in-kernel
    comb = pallas_upsample_combine(mask_r, uf_r)                 # (B, 2, HW, 256)
    up = (comb.reshape(Bn, 2, Hh, Ww, 16, 16)
              .transpose(0, 1, 2, 4, 3, 5)
              .reshape(Bn, 2, 16 * Hh, 16 * Ww))
    bm_up = coodslar + up                                        # (B, 2, 16h, 16w)
    return bm_up


# ----------------------------------------------------------------------------
# Main
# ----------------------------------------------------------------------------

if __name__ == "__main__":
    cfg = dict(image_size=32, patch_size=16, num_classes=10, dim=64, depth=2,
               heads=2, dim_head=16, mlp_dim=128, channels=3)

    key = jax.random.PRNGKey(0)
    kp, ki = jax.random.split(key)
    params = init_params(kp, cfg)

    k1, k2 = jax.random.split(ki)
    img0 = jax.random.normal(k1, (cfg["channels"], 32, 32), F32)
    img1 = jax.random.normal(k2, (cfg["channels"], 32, 32), F32)
    batched_images = [[img0], [img1]]                    # 2 groups x 1 image

    out = navit_forward(params, batched_images, cfg)
    out = jax.block_until_ready(out)

    assert out.shape == (2, 2, 32, 32), out.shape
    assert bool(jnp.all(jnp.isfinite(out)))
    print("KERNEL_OK")
</pallas_src>

<mosaic_0001>
module attributes {stable_mosaic.version = 11 : i64} {
  func.func @_ln_mm_kernel(%arg0: i32, %arg1: i32, %arg2: memref<8x768xf32, #tpu.memory_space<vmem>>, %arg3: memref<1x768xf32, #tpu.memory_space<vmem>>, %arg4: memref<1x768xf32, #tpu.memory_space<vmem>>, %arg5: memref<768x64xbf16, #tpu.memory_space<vmem>>, %arg6: memref<1x64xf32, #tpu.memory_space<vmem>>, %arg7: memref<8x64xf32, #tpu.memory_space<vmem>>) attributes {dimension_semantics = [#tpu.dimension_semantics<parallel>, #tpu.dimension_semantics<parallel>], iteration_bounds = array<i64: 1, 1>, scalar_prefetch = 0 : i64, scratch_operands = 0 : i64, tpu.core_type = #tpu.core_type<tc>, window_params = [{transform_indices = @transform_0, window_bounds = array<i64: 8, 768>}, {pipeline_mode = #tpu.pipeline_mode<synchronous>, transform_indices = @transform_1, window_bounds = array<i64: 1, 768>}, {pipeline_mode = #tpu.pipeline_mode<synchronous>, transform_indices = @transform_2, window_bounds = array<i64: 1, 768>}, {transform_indices = @transform_3, window_bounds = array<i64: 768, 64>}, {transform_indices = @transform_4, window_bounds = array<i64: 1, 64>}, {transform_indices = @transform_5, window_bounds = array<i64: 8, 64>}]} {
    %c0 = arith.constant 0 : index
    %c0_0 = arith.constant 0 : index
    %0 = vector.load %arg2[%c0, %c0_0] : memref<8x768xf32, #tpu.memory_space<vmem>>, vector<8x768xf32>
    %cst = arith.constant dense<0.000000e+00> : vector<8xf32>
    %1 = vector.multi_reduction <add>, %0, %cst [1] : vector<8x768xf32> to vector<8xf32>
    %2 = vector.shape_cast %1 : vector<8xf32> to vector<8x1xf32>
    %cst_1 = arith.constant 7.680000e+02 : f32
    %3 = vector.broadcast %cst_1 : f32 to vector<8x1xf32>
    %4 = arith.divf %2, %3 : vector<8x1xf32>
    %5 = vector.broadcast %4 : vector<8x1xf32> to vector<8x768xf32>
    %6 = arith.subf %0, %5 : vector<8x768xf32>
    %7 = arith.mulf %6, %6 : vector<8x768xf32>
    %cst_2 = arith.constant dense<0.000000e+00> : vector<8xf32>
    %8 = vector.multi_reduction <add>, %7, %cst_2 [1] : vector<8x768xf32> to vector<8xf32>
    %9 = vector.shape_cast %8 : vector<8xf32> to vector<8x1xf32>
    %cst_3 = arith.constant 7.680000e+02 : f32
    %10 = vector.broadcast %cst_3 : f32 to vector<8x1xf32>
    %11 = arith.divf %9, %10 : vector<8x1xf32>
    %cst_4 = arith.constant 9.99999974E-6 : f32
    %12 = vector.broadcast %cst_4 : f32 to vector<8x1xf32>
    %13 = arith.addf %11, %12 : vector<8x1xf32>
    %14 = math.rsqrt %13 : vector<8x1xf32>
    %15 = vector.broadcast %14 : vector<8x1xf32> to vector<8x768xf32>
    %16 = arith.mulf %6, %15 : vector<8x768xf32>
    %c0_5 = arith.constant 0 : index
    %c0_6 = arith.constant 0 : index
    %17 = vector.load %arg3[%c0_5, %c0_6] : memref<1x768xf32, #tpu.memory_space<vmem>>, vector<1x768xf32>
    %18 = vector.broadcast %17 : vector<1x768xf32> to vector<8x768xf32>
    %19 = arith.mulf %16, %18 : vector<8x768xf32>
    %c0_7 = arith.constant 0 : index
    %c0_8 = arith.constant 0 : index
    %20 = vector.load %arg4[%c0_7, %c0_8] : memref<1x768xf32, #tpu.memory_space<vmem>>, vector<1x768xf32>
    %21 = vector.broadcast %20 : vector<1x768xf32> to vector<8x768xf32>
    %22 = arith.addf %19, %21 : vector<8x768xf32>
    %23 = arith.truncf %22 : vector<8x768xf32> to vector<8x768xbf16>
    %c0_9 = arith.constant 0 : index
    %c0_10 = arith.constant 0 : index
    %24 = vector.load %arg5[%c0_9, %c0_10] : memref<768x64xbf16, #tpu.memory_space<vmem>>, vector<768x64xbf16>
    %cst_11 = arith.constant dense<0.000000e+00> : vector<8x64xf32>
    %25 = tpu.matmul %23, %24, %cst_11 {dimension_numbers = #tpu.dot_dimension_numbers<[1], [0], [0], [1], [0, 0, 1, 1], [], []>} : vector<8x768xbf16>, vector<768x64xbf16>, vector<8x64xf32> -> vector<8x64xf32>
    %c0_12 = arith.constant 0 : index
    %c0_13 = arith.constant 0 : index
    %26 = vector.load %arg6[%c0_12, %c0_13] : memref<1x64xf32, #tpu.memory_space<vmem>>, vector<1x64xf32>
    %27 = vector.broadcast %26 : vector<1x64xf32> to vector<8x64xf32>
    %28 = arith.addf %25, %27 : vector<8x64xf32>
    %c0_14 = arith.constant 0 : index
    %c0_15 = arith.constant 0 : index
    %29 = vector.load %arg7[%c0_14, %c0_15] : memref<8x64xf32, #tpu.memory_space<vmem>>, vector<8x64xf32>
    tpu.vector_store %arg7[%c0_14, %c0_15], %28 {strides = array<i32>} : memref<8x64xf32, #tpu.memory_space<vmem>>, vector<8x64xf32>,
    return
  }
  func.func @transform_0(%arg0: i32, %arg1: i32) -> (i32, i32) {
    %c0_i32 = arith.constant 0 : i32
    %c0_i32_0 = arith.constant 0 : i32
    return %arg0, %c0_i32 : i32, i32
  }
  func.func @transform_1(%arg0: i32, %arg1: i32) -> (i32, i32) {
    %c0_i32 = arith.constant 0 : i32
    %c0_i32_0 = arith.constant 0 : i32
    %c0_i32_1 = arith.constant 0 : i32
    return %c0_i32, %c0_i32_0 : i32, i32
  }
  func.func @transform_2(%arg0: i32, %arg1: i32) -> (i32, i32) {
    %c0_i32 = arith.constant 0 : i32
    %c0_i32_0 = arith.constant 0 : i32
    %c0_i32_1 = arith.constant 0 : i32
    return %c0_i32, %c0_i32_0 : i32, i32
  }
  func.func @transform_3(%arg0: i32, %arg1: i32) -> (i32, i32) {
    %c0_i32 = arith.constant 0 : i32
    %c0_i32_0 = arith.constant 0 : i32
    return %c0_i32, %arg1 : i32, i32
  }
  func.func @transform_4(%arg0: i32, %arg1: i32) -> (i32, i32) {
    %c0_i32 = arith.constant 0 : i32
    %c0_i32_0 = arith.constant 0 : i32
    return %c0_i32, %arg1 : i32, i32
  }
  func.func @transform_5(%arg0: i32, %arg1: i32) -> (i32, i32) {
    %c0_i32 = arith.constant 0 : i32
    return %arg0, %arg1 : i32, i32
  }
}

</mosaic_0001>

<bundles_post_ra>
// kernel: tpu_custom_call.1
= control target key start
LH: loop header
LB: loop body
LE: loop exit
PB: predicated region body
PF: predicated region fallthrough
CT: control target
= control target key end

     0   :  { %s1122_s0 = inlined_call_operand.vmem [shape: f32[8,768], index: 0, kind: input, shape index: {}]   ;;  %s1123_s1 = inlined_call_operand.vmem [shape: f32[1,768], index: 1, kind: input, shape index: {}]   ;;  %s1124_s2 = inlined_call_operand.vmem [shape: f32[1,768], index: 2, kind: input, shape index: {}]   ;;  %s1125_s3 = inlined_call_operand.vmem [shape: bf16[768,64], index: 3, kind: input, shape index: {}]   ;;  %s1126_s4 = inlined_call_operand.vmem [shape: f32[1,64], index: 4, kind: input, shape index: {}]   ;;  %s1127_s5 = inlined_call_operand.hbm [shape: f32[8,64], index: 5, kind: output, shape index: {}]  }
   0x1   :  { %v21_v0 = vld [vmem:[%s1122_s0] sm:$0xff]  ;;  %v22_v1 = vld [vmem:[%s1122_s0 + $0x8] sm:$0xff]  ;;  %v23_v2 = vld [vmem:[%s1122_s0 + $0x10] sm:$0xff] }
   0x2   :  { %v27_v3 = vadd.f32 %v22_v1, %v21_v0  ;;  %v24_v4 = vld [vmem:[%s1122_s0 + $0x18] sm:$0xff] }
   0x3   :  { %10 = vsyncpa [#allocation3], 0  ;;  %v25_v6 = vld [vmem:[%s1122_s0 + $0x20] sm:$0xff]  ;;  %v26_v8 = vld [vmem:[%s1122_s0 + $0x28] sm:$0xff]  ;;  %v882_v11 = vmov 768.0   ;;  %s600_s29 = sshll.u32 %s1127_s5, 4  ;;  %s601_s29 = int_to_ptr.hbm [resolvable:$true] %s600_s29 }
   0x4   :  { %v28_v5 = vadd.f32 %v27_v3, %v23_v2  ;;  %852 = vrcp.f32 %v882_v11  ;;  %v808_v14 = vld [vmem:[%s1125_s3 + $0x38] sm:$0xff]  ;;  %v807_v17 = vld [vmem:[%s1125_s3 + $0x30] sm:$0xff]  ;;  %v806_v22 = vld [vmem:[%s1125_s3 + $0x28] sm:$0xff]  ;;  %vm591_vm4 = vcmask 523264  }
   0x5   :  { %v816_v15 = vld [vmem:[%s1125_s3 + $0x78] sm:$0xff]  ;;  %513 = vmatpush.bf16.msra.mxu0 %v808_v14  ;;  %v815_v18 = vld [vmem:[%s1125_s3 + $0x70] sm:$0xff]  ;;  %v814_v23 = vld [vmem:[%s1125_s3 + $0x68] sm:$0xff] }
   0x6   :  { %v29_v7 = vadd.f32 %v28_v5, %v24_v4  ;;  %526 = vmatpush.bf16.msra.mxu1 %v816_v15  ;;  %v824_v19 = vld [vmem:[%s1125_s3 + $0xb8] sm:$0xff]  ;;  %v805_v25 = vld [vmem:[%s1125_s3 + $0x20] sm:$0xff]  ;;  %v823_v49 = vld [vmem:[%s1125_s3 + $0xb0] sm:$0xff] }
   0x7   :  { %v832_v20 = vld [vmem:[%s1125_s3 + $0xf8] sm:$0xff]  ;;  %539 = vmatpush.bf16.msra.mxu2 %v824_v19  ;;  %v813_v26 = vld [vmem:[%s1125_s3 + $0x60] sm:$0xff]  ;;  %v831_v50 = vld [vmem:[%s1125_s3 + $0xf0] sm:$0xff] }
   0x8   :  { %v30_v9 = vadd.f32 %v29_v7, %v25_v6  ;;  %552 = vmatpush.bf16.msra.mxu3 %v832_v20  ;;  %v804_v47 = vld [vmem:[%s1125_s3 + $0x18] sm:$0xff]  ;;  %v803_v51 = vld [vmem:[%s1125_s3 + $0x10] sm:$0xff]  ;;  %v822_v53 = vld [vmem:[%s1125_s3 + $0xa8] sm:$0xff] }
   0x9   :  { %514 = vmatpush.bf16.msra.mxu0 %v807_v17  ;;  %v812_v48 = vld [vmem:[%s1125_s3 + $0x58] sm:$0xff]  ;;  %v811_v52 = vld [vmem:[%s1125_s3 + $0x50] sm:$0xff]  ;;  %v830_v54 = vld [vmem:[%s1125_s3 + $0xe8] sm:$0xff] }
   0xa   :  { %v31_v10 = vadd.f32 %v30_v9, %v26_v8  ;;  %v853_v12 = vpop.eup %852  ;;  %527 = vmatpush.bf16.msra.mxu1 %v815_v18  ;;  %v802_v55 = vld [vmem:[%s1125_s3 + $0x8] sm:$0xff]  ;;  %v821_v57 = vld [vmem:[%s1125_s3 + $0xa0] sm:$0xff]  ;;  %v820_v61 = vld [vmem:[%s1125_s3 + $0x98] sm:$0xff] }
   0xb   :  { %v35_v13 = vmul.f32 768.0, %v853_v12  ;;  %vm39_vm0 = vweird.f32 %v853_v12  ;;  %540 = vmatpush.bf16.msra.mxu2 %v823_v49  ;;  %v810_v56 = vld [vmem:[%s1125_s3 + $0x48] sm:$0xff]  ;;  %v829_v58 = vld [vmem:[%s1125_s3 + $0xe0] sm:$0xff]  ;;  %v828_v62 = vld [vmem:[%s1125_s3 + $0xd8] sm:$0xff] }
   0xc   :  { %32 = vadd.xlane.f32.xlu0 %v31_v10  ;;  %553 = vmatpush.bf16.msra.mxu3 %v831_v50  ;;  %v801_v59 = vld [vmem:[%s1125_s3] sm:$0xff]  ;;  %v840_v63 = vld [vmem:[%s1125_s3 + $0x138] sm:$0xff]  ;;  %v839_v3 = vld [vmem:[%s1125_s3 + $0x130] sm:$0xff] }
   0xd   :  { %v36_v16 = vsub.f32 1.0, %v35_v13  ;;  %515 = vmatpush.bf16.msra.mxu0 %v806_v22  ;;  %v809_v60 = vld [vmem:[%s1125_s3 + $0x40] sm:$0xff]  ;;  %v818_v5 = vld [vmem:[%s1125_s3 + $0x88] sm:$0xff]  ;;  %v836_v13 = vld [vmem:[%s1125_s3 + $0x118] sm:$0xff] }
   0xe   :  { %528 = vmatpush.bf16.msra.mxu1 %v814_v23  ;;  %v838_v7 = vld [vmem:[%s1125_s3 + $0x128] sm:$0xff]  ;;  %v817_v9 = vld [vmem:[%s1125_s3 + $0x80] sm:$0xff]  ;;  %v844_v14 = vld [vmem:[%s1125_s3 + $0x158] sm:$0xff] }
   0xf   :  { %v37_v21 = vmul.f32 %v853_v12, %v36_v16  ;;  %541 = vmatpush.bf16.msra.mxu2 %v822_v53  ;;  %v825_v10 = vld [vmem:[%s1125_s3 + $0xc0] sm:$0xff]  ;;  %v835_v17 = vld [vmem:[%s1125_s3 + $0x110] sm:$0xff]  ;;  %v834_v20 = vld [vmem:[%s1125_s3 + $0x108] sm:$0xff] }
  0x10   :  { %554 = vmatpush.bf16.msra.mxu3 %v830_v54  ;;  %v837_v11 = vld [vmem:[%s1125_s3 + $0x120] sm:$0xff]  ;;  %v843_v18 = vld [vmem:[%s1125_s3 + $0x150] sm:$0xff] }
  0x11   :  { %v38_v24 = vadd.f32 %v853_v12, %v37_v21  ;;  %516 = vmatpush.bf16.msra.mxu0 %v805_v25  ;;  %v842_v21 = vld [vmem:[%s1125_s3 + $0x148] sm:$0xff]  ;;  %v833_v22 = vld [vmem:[%s1125_s3 + $0x100] sm:$0xff] }
  0x12   :  { %529 = vmatpush.bf16.msra.mxu1 %v813_v26  ;;  %v841_v23 = vld [vmem:[%s1125_s3 + $0x140] sm:$0xff] }
  0x13   :  { %v962_v27 = vsel %vm39_vm0, %v853_v12, %v38_v24  ;;  %542 = vmatpush.bf16.msra.mxu2 %v821_v57  ;;  %v845_v12 = vld [vmem:[%s1125_s3 + $0x160] sm:$0xff] }
  0x14   :  { %555 = vmatpush.bf16.msra.mxu3 %v829_v58 }
  0x15   :  { %517 = vmatpush.bf16.msra.mxu0 %v804_v47 }
  0x16   :  { %530 = vmatpush.bf16.msra.mxu1 %v812_v48 }
  0x17   :  { %543 = vmatpush.bf16.msra.mxu2 %v820_v61 }
  0x18   :  { %556 = vmatpush.bf16.msra.mxu3 %v828_v62 }
  0x19   :  { %518 = vmatpush.bf16.msra.mxu0 %v803_v51 }
  0x1a   :  { %531 = vmatpush.bf16.msra.mxu1 %v811_v52 }
  0x1d   :  { %519 = vmatpush.bf16.msra.mxu0 %v802_v55 }
  0x1e   :  { %532 = vmatpush.bf16.msra.mxu1 %v810_v56 }
  0x21   :  { %520 = vmatpush.bf16.msra.mxu0 %v801_v59 }
  0x22   :  { %533 = vmatpush.bf16.msra.mxu1 %v809_v60 }
  0x25   :  { %565 = vmatpush.bf16.msrb.mxu0 %v840_v63 }
  0x29   :  { %566 = vmatpush.bf16.msrb.mxu0 %v839_v3 }
  0x2d   :  { %567 = vmatpush.bf16.msrb.mxu0 %v838_v7 }
  0x31   :  { %568 = vmatpush.bf16.msrb.mxu0 %v837_v11 }
  0x35   :  { %569 = vmatpush.bf16.msrb.mxu0 %v836_v13 }
  0x39   :  { %570 = vmatpush.bf16.msrb.mxu0 %v835_v17 }
  0x3d   :  { %571 = vmatpush.bf16.msrb.mxu0 %v834_v20 }
  0x41   :  { %572 = vmatpush.bf16.msrb.mxu0 %v833_v22 }
  0x7f   :  { %v33_v28 = vpop.xlane.xlu0 %32 }
  0x80   :  { %v41_v29 = vmul.f32 %v962_v27, %v33_v28  ;;  %v79_v28 = vld [vmem:[%s1123_s1] sm:$0x3f] }
  0x82   :  { %v965_v30 = vsub.f32 %v21_v0, %v41_v29  ;;  %v967_v31 = vsub.f32 %v22_v1, %v41_v29  ;;  %v969_v32 = vsub.f32 %v23_v2, %v41_v29  ;;  %v971_v33 = vsub.f32 %v24_v4, %v41_v29  ;;  %v848_v0 = vld [vmem:[%s1125_s3 + $0x178] sm:$0xff]  ;;  %v819_v1 = vld [vmem:[%s1125_s3 + $0x90] sm:$0xff] }
  0x83   :  { %v977_v36 = vsub.f32 %v25_v6, %v41_v29  ;;  %v981_v39 = vsub.f32 %v26_v8, %v41_v29  ;;  %578 = vmatpush.bf16.msrb.mxu1 %v848_v0  ;;  %v827_v2 = vld [vmem:[%s1125_s3 + $0xd0] sm:$0xff]  ;;  %544 = vmatpush.bf16.msra.mxu2 %v819_v1  ;;  %v826_v6 = vld [vmem:[%s1125_s3 + $0xc8] sm:$0xff] }
  0x84   :  { %v48_v34 = vmul.f32 %v965_v30, %v965_v30  ;;  %v49_v35 = vmul.f32 %v967_v31, %v967_v31  ;;  %v50_v37 = vmul.f32 %v969_v32, %v969_v32  ;;  %v51_v40 = vmul.f32 %v971_v33, %v971_v33  ;;  %v847_v4 = vld [vmem:[%s1125_s3 + $0x170] sm:$0xff]  ;;  %557 = vmatpush.bf16.msra.mxu3 %v827_v2  ;;  %v846_v8 = vld [vmem:[%s1125_s3 + $0x168] sm:$0xff]  ;;  %s883_s3 = smov [#allocation2]  }
  0x85   :  { %v52_v42 = vmul.f32 %v977_v36, %v977_v36  ;;  %v53_v44 = vmul.f32 %v981_v39, %v981_v39  ;;  %s598_s26 = sshll.u32 %s883_s3, 4  ;;  %s599_s26 = int_to_ptr.vmem [resolvable:$true] %s598_s26 }
  0x86   :  { %v54_v38 = vadd.f32 %v49_v35, %v48_v34  ;;  %v99_v34 = vld [vmem:[%s1124_s2] sm:$0x3f] }
  0x87   :  { %579 = vmatpush.bf16.msrb.mxu1 %v847_v4  ;;  %545 = vmatpush.bf16.msra.mxu2 %v818_v5  ;;  %v105_v0 = vperm.slane %v99_v34, 4  ;;  %v106_v2 = vperm.slane %v99_v34, 5 }
  0x88   :  { %v55_v41 = vadd.f32 %v54_v38, %v50_v37  ;;  %558 = vmatpush.bf16.msra.mxu3 %v826_v6  ;;  %v81_v37 = vperm.slane %v79_v28, 0  ;;  %v101_v38 = vperm.slane %v99_v34, 0 }
  0x8a   :  { %v56_v43 = vadd.f32 %v55_v41, %v51_v40  ;;  %v82_v40 = vperm.slane %v79_v28, 1  ;;  %v83_v41 = vperm.slane %v79_v28, 2 }
  0x8b   :  { %580 = vmatpush.bf16.msrb.mxu1 %v846_v8  ;;  %546 = vmatpush.bf16.msra.mxu2 %v817_v9 }
  0x8c   :  { %v57_v45 = vadd.f32 %v56_v43, %v52_v42  ;;  %559 = vmatpush.bf16.msra.mxu3 %v825_v10  ;;  %v84_v42 = vperm.slane %v79_v28, 3 }
  0x8e   :  { %v58_v46 = vadd.f32 %v57_v45, %v53_v44  ;;  %v102_v44 = vperm.slane %v99_v34, 1  ;;  %v103_v45 = vperm.slane %v99_v34, 2 }
  0x8f   :  { %581 = vmatpush.bf16.msrb.mxu1 %v845_v12 }
  0x90   :  { %59 = vadd.xlane.f32.xlu0 %v58_v46  ;;  %v104_v46 = vperm.slane %v99_v34, 3 }
  0x93   :  { %582 = vmatpush.bf16.msrb.mxu1 %v844_v14 }
  0x97   :  { %583 = vmatpush.bf16.msrb.mxu1 %v843_v18 }
  0x9b   :  { %584 = vmatpush.bf16.msrb.mxu1 %v842_v21 }
  0x9f   :  { %585 = vmatpush.bf16.msrb.mxu1 %v841_v23 }
 0x103   :  { %v60_v15 = vpop.xlane.xlu0 %59 }
 0x104   :  { %v61_v16 = vmul.f32 %v60_v15, %v962_v27 }
 0x106   :  { %v62_v19 = vadd.f32 1e-05, %v61_v16 }
 0x108   :  { %854 = vrsqrt.f32 %v62_v19  ;;  %vm69_vm2 = vweird.f32 %v62_v19 }
 0x10e   :  { %v855_v24 = vpop.eup %854 }
 0x10f   :  { %v64_v25 = vmul.f32 %v855_v24, %v62_v19  ;;  %vm70_vm1 = vweird.f32 %v855_v24 }
 0x110   :  { %vm71_vm3 = vmor %vm69_vm2, %vm70_vm1 }
 0x111   :  { %v65_v26 = vmul.f32 %v855_v24, %v64_v25 }
 0x113   :  { %v66_v27 = vmul.f32 0.5, %v65_v26 }
 0x115   :  { %v67_v29 = vsub.f32 1.5, %v66_v27 }
 0x117   :  { %v68_v35 = vmul.f32 %v855_v24, %v67_v29 }
 0x119   :  { %v72_v43 = vsel %vm71_vm3, %v855_v24, %v68_v35 }
 0x11a   :  { %v73_v47 = vmul.f32 %v72_v43, %v965_v30  ;;  %v74_v48 = vmul.f32 %v72_v43, %v967_v31  ;;  %v75_v49 = vmul.f32 %v72_v43, %v969_v32  ;;  %v76_v50 = vmul.f32 %v72_v43, %v971_v33 }
 0x11b   :  { %v77_v30 = vmul.f32 %v72_v43, %v977_v36  ;;  %v85_v31 = vperm.slane %v79_v28, 4  ;;  %v78_v32 = vmul.f32 %v72_v43, %v981_v39  ;;  %v86_v33 = vperm.slane %v79_v28, 5  ;;  %v851_v36 = vld [vmem:[%s1126_s4] ss:$0 sm:$0xff] }
 0x11c   :  { %v93_v51 = vmul.f32 %v81_v37, %v73_v47  ;;  %v94_v52 = vmul.f32 %v82_v40, %v74_v48  ;;  %v95_v53 = vmul.f32 %v83_v41, %v75_v49  ;;  %v96_v54 = vmul.f32 %v84_v42, %v76_v50 }
 0x11d   :  { %v97_v63 = vmul.f32 %v85_v31, %v77_v30  ;;  %v98_v1 = vmul.f32 %v86_v33, %v78_v32 }
 0x11e   :  { %v113_v55 = vadd.f32 %v101_v38, %v93_v51  ;;  %v114_v56 = vadd.f32 %v102_v44, %v94_v52  ;;  %v115_v57 = vadd.f32 %v103_v45, %v95_v53  ;;  %v116_v58 = vadd.f32 %v104_v46, %v96_v54 }
 0x11f   :  { %v117_v3 = vadd.f32 %v105_v0, %v97_v63  ;;  %v118_v4 = vadd.f32 %v106_v2, %v98_v1 }
 0x120   :  { %v119_v59 = vpack.c.bf16 %v113_v55, %v113_v55  ;;  %v120_v60 = vpack.c.bf16 %v114_v56, %v114_v56  ;;  %v121_v61 = vpack.c.bf16 %v115_v57, %v115_v57  ;;  %v122_v62 = vpack.c.bf16 %v116_v58, %v116_v58 }
 0x121   :  { %v123_v5 = vpack.c.bf16 %v117_v3, %v117_v3  ;;  %v124_v6 = vpack.c.bf16 %v118_v4, %v118_v4 }
 0x122   :  { %521 = vmatmul.bf16.vlgmr.msra.gmra.mxu0 %v119_v59  ;;  %534 = vmatmul.bf16.vlgmr.msra.gmra.mxu1 %v120_v60 }
 0x123   :  { %547 = vmatmul.bf16.vlgmr.msra.gmra.mxu2 %v121_v61  ;;  %560 = vmatmul.bf16.vlgmr.msra.gmra.mxu3 %v122_v62 }
 0x132   :  { %573 = vmatmul.bf16.vlgmr.msrb.gmra.mxu0 %v123_v5  ;;  %586 = vmatmul.bf16.vlgmr.msrb.gmra.mxu1 %v124_v6 }
 0x19f   :  { %v522_v7 = vpop.f32.mrf.mxu0  ;;  %v535_v8 = vpop.f32.mrf.mxu1 }
 0x1a0   :  { %v523_v9 = vadd.f32 %v851_v36, %v522_v7 }
 0x1a2   :  { %v536_v13 = vadd.f32 %v535_v8, %v523_v9 }
 0x1a6   :  { %v548_v10 = vpop.f32.mrf.mxu2  ;;  %v561_v39 = vpop.f32.mrf.mxu3 }
 0x1a7   :  { %v524_v11 = vpop.f32.mrf.mxu0  ;;  %v537_v12 = vpop.f32.mrf.mxu1  ;;  %v549_v14 = vadd.f32 %v548_v10, %v536_v13 }
 0x1a9   :  { %v562_v15 = vadd.f32 %v561_v39, %v549_v14 }
 0x1ae   :  { %v550_v16 = vpop.f32.mrf.mxu2  ;;  %v563_v17 = vpop.f32.mrf.mxu3 }
 0x1af   :  { %v574_v18 = vpop.f32.mrf.mxu0  ;;  %v587_v19 = vpop.f32.mrf.mxu1 }
 0x1b0   :  { %v575_v20 = vadd.f32 %v574_v18, %v562_v15 }
 0x1b2   :  { %v588_v21 = vadd.f32 %v587_v19, %v575_v20 }
 0x1b4   :  { %592 = vst.msk [vmem:[#allocation2] sm:$0xff] %vm591_vm4, %v588_v21 }
 0x1b5   :  { %603 = dma.vmem_to_hbm [thread:$0]  %s599_s26, 128, %s601_s29, [#allocation3]  }
 0x1b7   :  { %v576_v22 = vpop.f32.mrf.mxu0  ;;  %v589_v23 = vpop.f32.mrf.mxu1 }
 0x1b8   :  { %880 = dma.done.wait [#allocation3], 128  }
 0x1b9   :  { %881 = vsyncadd [#allocation3], 4294967168 }
 0x1ba   :  { %608 = vsyncpa [#allocation3], 1 }

</bundles_post_ra>
